<compile_context>
chip_gen: v7x
topology: tpu7x:2x2x1
jax: 0.10.0
libtpu: 0.0.40
codegen_flags: <defaults>
</compile_context>

<pallas_src>
import functools
import math

import jax
import jax.numpy as jnp
from jax import lax
from jax.experimental import pallas as pl
from jax.experimental.pallas import tpu as pltpu  # noqa: F401  (TPU backend)


# ----------------------------------------------------------------------------
# Single fused kernel: Q/K/V linear projections + multi-head attention.
# All operands live as full VMEM blocks (a few KiB total at these sizes).
# ----------------------------------------------------------------------------
def _fused_mha_kernel(q_ref, k_ref, v_ref,
                      wq_ref, bq_ref, wk_ref, bk_ref, wv_ref, bv_ref,
                      ctx_ref, attn_ref,
                      *, B, S, num_heads, head_size):
    # wq_ref / bq_ref arrive pre-transposed to (H_in, H_out) AND pre-scaled by
    # 1/sqrt(head_size), so the score matmul below needs no extra divide.
    Qs = jnp.dot(q_ref[...], wq_ref[...],
                 preferred_element_type=jnp.float32) + bq_ref[...]
    K = jnp.dot(k_ref[...], wk_ref[...],
                preferred_element_type=jnp.float32) + bk_ref[...]
    V = jnp.dot(v_ref[...], wv_ref[...],
                preferred_element_type=jnp.float32) + bv_ref[...]

    # Per-(batch, head) attention, fully unrolled — B*num_heads is tiny here.
    # TODO(synk): optional `mask` argument of the PyTorch forward is not wired
    # through (mask=None default path only).
    # TODO(synk): at non-toy sizes, reintroduce a "parallel" batch grid axis
    # (v7x has 2 TensorCores) and tile the (S, S) score block against the
    # 64 MiB v7x VMEM budget.
    for b in range(B):
        rows = slice(b * S, (b + 1) * S)
        ctx_heads = []
        for h in range(num_heads):
            cols = slice(h * head_size, (h + 1) * head_size)
            q_bh = Qs[rows, cols]          # (S, hd), already carries 1/sqrt(hd)
            k_bh = K[rows, cols]           # (S, hd)
            v_bh = V[rows, cols]           # (S, hd)
            # scores = q @ k^T without materializing a transposed copy of K.
            scores = lax.dot_general(
                q_bh, k_bh,
                dimension_numbers=(((1,), (1,)), ((), ())),
                preferred_element_type=jnp.float32)      # (S, S)
            m = jnp.max(scores, axis=-1, keepdims=True)
            e = jnp.exp(scores - m)
            # Exact divide (not pl.reciprocal(approx=True)) to keep 1e-4 parity.
            p = e / jnp.sum(e, axis=-1, keepdims=True)
            attn_ref[b, h] = p
            ctx_heads.append(jnp.dot(p, v_bh,
                                     preferred_element_type=jnp.float32))
        # One (S, H) store per batch row, directly in the final (B, S, H)
        # layout — no wrapper-side transpose / second HBM pass afterwards.
        ctx_ref[b] = jnp.concatenate(ctx_heads, axis=-1)


# ----------------------------------------------------------------------------
# Wrapper (only cheap layout prep stays in plain JAX)
# ----------------------------------------------------------------------------
def multihead_attention_2(query, key, value, params, num_heads):
    """Faithful re-implementation of MultiheadAttention_2.forward (mask=None).

    query/key/value: (S, B, H) float32.
    params: (wq, bq, wk, bk, wv, bv) with w*: (H, H) in torch (out, in) layout.
    Returns (context_vector (B, S, H), attention_weights (B, nh, S, S)).
    """
    wq, bq, wk, bk, wv, bv = params
    Sq, B, H = query.shape
    Sk = key.shape[0]
    assert Sq == Sk == value.shape[0], "kernel assumes equal q/k/v seq lengths"
    assert H % num_heads == 0
    head_size = H // num_heads
    R = Sq * B
    scale = 1.0 / math.sqrt(head_size)

    q2d = query.reshape(R, H)
    k2d = key.reshape(R, H)
    v2d = value.reshape(R, H)

    kernel = functools.partial(
        _fused_mha_kernel, B=B, S=Sq, num_heads=num_heads, head_size=head_size)

    ctx, attn = pl.pallas_call(
        kernel,
        out_shape=(
            jax.ShapeDtypeStruct((B, Sq, H), jnp.float32),
            jax.ShapeDtypeStruct((B, num_heads, Sq, Sk), jnp.float32),
        ),
    )(q2d, k2d, v2d,
      (wq.T * scale), (bq * scale).reshape(1, H),   # scale folded into Q proj
      wk.T, bk.reshape(1, H),
      wv.T, bv.reshape(1, H))

    return ctx, attn


# ----------------------------------------------------------------------------
# Pure-JAX reference (mirrors the PyTorch forward) for a correctness check.
# ----------------------------------------------------------------------------
def _reference(query, key, value, params, num_heads):
    wq, bq, wk, bk, wv, bv = params
    Sq, B, H = query.shape
    Sk = key.shape[0]
    hd = H // num_heads
    Q = (query.reshape(-1, H) @ wq.T + bq).reshape(B, Sq, num_heads, hd).transpose(0, 2, 1, 3)
    K = (key.reshape(-1, H) @ wk.T + bk).reshape(B, Sk, num_heads, hd).transpose(0, 2, 1, 3)
    V = (value.reshape(-1, H) @ wv.T + bv).reshape(B, Sk, num_heads, hd).transpose(0, 2, 1, 3)
    scores = jnp.einsum('bhqd,bhkd->bhqk', Q, K) / math.sqrt(hd)
    attn = jax.nn.softmax(scores, axis=-1)
    ctx = jnp.einsum('bhqk,bhkd->bhqd', attn, V)
    context = ctx.transpose(0, 2, 1, 3).reshape(B, Sq, H)
    return context, attn


if __name__ == "__main__":
    hidden_size = 32
    num_heads = 4
    seq = 8
    batch = 2

    root = jax.random.PRNGKey(0)
    ks = jax.random.split(root, 9)
    bound = 1.0 / math.sqrt(hidden_size)  # nn.Linear-style uniform init

    wq = jax.random.uniform(ks[0], (hidden_size, hidden_size), jnp.float32, -bound, bound)
    bq = jax.random.uniform(ks[1], (hidden_size,), jnp.float32, -bound, bound)
    wk = jax.random.uniform(ks[2], (hidden_size, hidden_size), jnp.float32, -bound, bound)
    bk = jax.random.uniform(ks[3], (hidden_size,), jnp.float32, -bound, bound)
    wv = jax.random.uniform(ks[4], (hidden_size, hidden_size), jnp.float32, -bound, bound)
    bv = jax.random.uniform(ks[5], (hidden_size,), jnp.float32, -bound, bound)
    params = (wq, bq, wk, bk, wv, bv)

    q_in = jax.random.normal(ks[6], (seq, batch, hidden_size), jnp.float32)
    k_in = jax.random.normal(ks[7], (seq, batch, hidden_size), jnp.float32)
    v_in = jax.random.normal(ks[8], (seq, batch, hidden_size), jnp.float32)

    ctx, attn = multihead_attention_2(q_in, k_in, v_in, params, num_heads)
    (ctx, attn) = jax.block_until_ready((ctx, attn))

    ref_ctx, ref_attn = _reference(q_in, k_in, v_in, params, num_heads)
    assert ctx.shape == (batch, seq, hidden_size)
    assert attn.shape == (batch, num_heads, seq, seq)
    assert jnp.allclose(ctx, ref_ctx, atol=1e-4, rtol=1e-4)
    assert jnp.allclose(attn, ref_attn, atol=1e-4, rtol=1e-4)

    print("KERNEL_OK")
</pallas_src>

<mosaic_0001>
module attributes {stable_mosaic.version = 11 : i64} {
  func.func @_fused_mha_kernel(%arg0: memref<16x32xf32, #tpu.memory_space<vmem>>, %arg1: memref<16x32xf32, #tpu.memory_space<vmem>>, %arg2: memref<16x32xf32, #tpu.memory_space<vmem>>, %arg3: memref<32x32xf32, #tpu.memory_space<vmem>>, %arg4: memref<1x32xf32, #tpu.memory_space<vmem>>, %arg5: memref<32x32xf32, #tpu.memory_space<vmem>>, %arg6: memref<1x32xf32, #tpu.memory_space<vmem>>, %arg7: memref<32x32xf32, #tpu.memory_space<vmem>>, %arg8: memref<1x32xf32, #tpu.memory_space<vmem>>, %arg9: memref<2x8x32xf32, #tpu.memory_space<vmem>>, %arg10: memref<2x4x8x8xf32, #tpu.memory_space<vmem>>) attributes {dimension_semantics = [], scalar_prefetch = 0 : i64, scratch_operands = 0 : i64, tpu.core_type = #tpu.core_type<tc>} {
    %c0 = arith.constant 0 : index
    %c0_0 = arith.constant 0 : index
    %0 = vector.load %arg0[%c0, %c0_0] : memref<16x32xf32, #tpu.memory_space<vmem>>, vector<16x32xf32>
    %c0_1 = arith.constant 0 : index
    %c0_2 = arith.constant 0 : index
    %1 = vector.load %arg3[%c0_1, %c0_2] : memref<32x32xf32, #tpu.memory_space<vmem>>, vector<32x32xf32>
    %cst = arith.constant dense<0.000000e+00> : vector<16x32xf32>
    %2 = tpu.matmul %0, %1, %cst {dimension_numbers = #tpu.dot_dimension_numbers<[1], [0], [0], [1], [0, 0, 1, 1], [], []>} : vector<16x32xf32>, vector<32x32xf32>, vector<16x32xf32> -> vector<16x32xf32>
    %c0_3 = arith.constant 0 : index
    %c0_4 = arith.constant 0 : index
    %3 = vector.load %arg4[%c0_3, %c0_4] : memref<1x32xf32, #tpu.memory_space<vmem>>, vector<1x32xf32>
    %4 = vector.broadcast %3 : vector<1x32xf32> to vector<16x32xf32>
    %5 = arith.addf %2, %4 : vector<16x32xf32>
    %c0_5 = arith.constant 0 : index
    %c0_6 = arith.constant 0 : index
    %6 = vector.load %arg1[%c0_5, %c0_6] : memref<16x32xf32, #tpu.memory_space<vmem>>, vector<16x32xf32>
    %c0_7 = arith.constant 0 : index
    %c0_8 = arith.constant 0 : index
    %7 = vector.load %arg5[%c0_7, %c0_8] : memref<32x32xf32, #tpu.memory_space<vmem>>, vector<32x32xf32>
    %cst_9 = arith.constant dense<0.000000e+00> : vector<16x32xf32>
    %8 = tpu.matmul %6, %7, %cst_9 {dimension_numbers = #tpu.dot_dimension_numbers<[1], [0], [0], [1], [0, 0, 1, 1], [], []>} : vector<16x32xf32>, vector<32x32xf32>, vector<16x32xf32> -> vector<16x32xf32>
    %c0_10 = arith.constant 0 : index
    %c0_11 = arith.constant 0 : index
    %9 = vector.load %arg6[%c0_10, %c0_11] : memref<1x32xf32, #tpu.memory_space<vmem>>, vector<1x32xf32>
    %10 = vector.broadcast %9 : vector<1x32xf32> to vector<16x32xf32>
    %11 = arith.addf %8, %10 : vector<16x32xf32>
    %c0_12 = arith.constant 0 : index
    %c0_13 = arith.constant 0 : index
    %12 = vector.load %arg2[%c0_12, %c0_13] : memref<16x32xf32, #tpu.memory_space<vmem>>, vector<16x32xf32>
    %c0_14 = arith.constant 0 : index
    %c0_15 = arith.constant 0 : index
    %13 = vector.load %arg7[%c0_14, %c0_15] : memref<32x32xf32, #tpu.memory_space<vmem>>, vector<32x32xf32>
    %cst_16 = arith.constant dense<0.000000e+00> : vector<16x32xf32>
    %14 = tpu.matmul %12, %13, %cst_16 {dimension_numbers = #tpu.dot_dimension_numbers<[1], [0], [0], [1], [0, 0, 1, 1], [], []>} : vector<16x32xf32>, vector<32x32xf32>, vector<16x32xf32> -> vector<16x32xf32>
    %c0_17 = arith.constant 0 : index
    %c0_18 = arith.constant 0 : index
    %15 = vector.load %arg8[%c0_17, %c0_18] : memref<1x32xf32, #tpu.memory_space<vmem>>, vector<1x32xf32>
    %16 = vector.broadcast %15 : vector<1x32xf32> to vector<16x32xf32>
    %17 = arith.addf %14, %16 : vector<16x32xf32>
    %18 = vector.extract_strided_slice %5 {offsets = [0, 0], sizes = [8, 8], strides = [1, 1]} : vector<16x32xf32> to vector<8x8xf32>
    %19 = vector.extract_strided_slice %11 {offsets = [0, 0], sizes = [8, 8], strides = [1, 1]} : vector<16x32xf32> to vector<8x8xf32>
    %20 = vector.extract_strided_slice %17 {offsets = [0, 0], sizes = [8, 8], strides = [1, 1]} : vector<16x32xf32> to vector<8x8xf32>
    %cst_19 = arith.constant dense<0.000000e+00> : vector<8x8xf32>
    %21 = tpu.matmul %18, %19, %cst_19 {dimension_numbers = #tpu.dot_dimension_numbers<[1], [1], [0], [0], [0, 0, 1, 0], [], []>} : vector<8x8xf32>, vector<8x8xf32>, vector<8x8xf32> -> vector<8x8xf32>
    %cst_20 = arith.constant dense<0xFF800000> : vector<8xf32>
    %22 = vector.multi_reduction <maximumf>, %21, %cst_20 [1] : vector<8x8xf32> to vector<8xf32>
    %23 = vector.shape_cast %22 : vector<8xf32> to vector<8x1xf32>
    %24 = vector.broadcast %23 : vector<8x1xf32> to vector<8x8xf32>
    %25 = arith.subf %21, %24 : vector<8x8xf32>
    %26 = math.exp %25 : vector<8x8xf32>
    %cst_21 = arith.constant dense<0.000000e+00> : vector<8xf32>
    %27 = vector.multi_reduction <add>, %26, %cst_21 [1] : vector<8x8xf32> to vector<8xf32>
    %28 = vector.shape_cast %27 : vector<8xf32> to vector<8x1xf32>
    %29 = vector.broadcast %28 : vector<8x1xf32> to vector<8x8xf32>
    %30 = arith.divf %26, %29 : vector<8x8xf32>
    %c0_22 = arith.constant 0 : index
    %c0_23 = arith.constant 0 : index
    %c0_24 = arith.constant 0 : index
    %c0_25 = arith.constant 0 : index
    %31 = vector.load %arg10[%c0_22, %c0_23, %c0_24, %c0_25] : memref<2x4x8x8xf32, #tpu.memory_space<vmem>>, vector<1x1x8x8xf32>
    %32 = vector.shape_cast %31 : vector<1x1x8x8xf32> to vector<8x8xf32>
    %33 = vector.shape_cast %30 : vector<8x8xf32> to vector<1x1x8x8xf32>
    tpu.vector_store %arg10[%c0_22, %c0_23, %c0_24, %c0_25], %33 {strides = array<i32>} : memref<2x4x8x8xf32, #tpu.memory_space<vmem>>, vector<1x1x8x8xf32>,
    %cst_26 = arith.constant dense<0.000000e+00> : vector<8x8xf32>
    %34 = tpu.matmul %30, %20, %cst_26 {dimension_numbers = #tpu.dot_dimension_numbers<[1], [0], [0], [1], [0, 0, 1, 1], [], []>} : vector<8x8xf32>, vector<8x8xf32>, vector<8x8xf32> -> vector<8x8xf32>
    %35 = vector.extract_strided_slice %5 {offsets = [0, 8], sizes = [8, 8], strides = [1, 1]} : vector<16x32xf32> to vector<8x8xf32>
    %36 = vector.extract_strided_slice %11 {offsets = [0, 8], sizes = [8, 8], strides = [1, 1]} : vector<16x32xf32> to vector<8x8xf32>
    %37 = vector.extract_strided_slice %17 {offsets = [0, 8], sizes = [8, 8], strides = [1, 1]} : vector<16x32xf32> to vector<8x8xf32>
    %cst_27 = arith.constant dense<0.000000e+00> : vector<8x8xf32>
    %38 = tpu.matmul %35, %36, %cst_27 {dimension_numbers = #tpu.dot_dimension_numbers<[1], [1], [0], [0], [0, 0, 1, 0], [], []>} : vector<8x8xf32>, vector<8x8xf32>, vector<8x8xf32> -> vector<8x8xf32>
    %cst_28 = arith.constant dense<0xFF800000> : vector<8xf32>
    %39 = vector.multi_reduction <maximumf>, %38, %cst_28 [1] : vector<8x8xf32> to vector<8xf32>
    %40 = vector.shape_cast %39 : vector<8xf32> to vector<8x1xf32>
    %41 = vector.broadcast %40 : vector<8x1xf32> to vector<8x8xf32>
    %42 = arith.subf %38, %41 : vector<8x8xf32>
    %43 = math.exp %42 : vector<8x8xf32>
    %cst_29 = arith.constant dense<0.000000e+00> : vector<8xf32>
    %44 = vector.multi_reduction <add>, %43, %cst_29 [1] : vector<8x8xf32> to vector<8xf32>
    %45 = vector.shape_cast %44 : vector<8xf32> to vector<8x1xf32>
    %46 = vector.broadcast %45 : vector<8x1xf32> to vector<8x8xf32>
    %47 = arith.divf %43, %46 : vector<8x8xf32>
    %c0_30 = arith.constant 0 : index
    %c1 = arith.constant 1 : index
    %c0_31 = arith.constant 0 : index
    %c0_32 = arith.constant 0 : index
    %48 = vector.load %arg10[%c0_30, %c1, %c0_31, %c0_32] : memref<2x4x8x8xf32, #tpu.memory_space<vmem>>, vector<1x1x8x8xf32>
    %49 = vector.shape_cast %48 : vector<1x1x8x8xf32> to vector<8x8xf32>
    %50 = vector.shape_cast %47 : vector<8x8xf32> to vector<1x1x8x8xf32>
    tpu.vector_store %arg10[%c0_30, %c1, %c0_31, %c0_32], %50 {strides = array<i32>} : memref<2x4x8x8xf32, #tpu.memory_space<vmem>>, vector<1x1x8x8xf32>,
    %cst_33 = arith.constant dense<0.000000e+00> : vector<8x8xf32>
    %51 = tpu.matmul %47, %37, %cst_33 {dimension_numbers = #tpu.dot_dimension_numbers<[1], [0], [0], [1], [0, 0, 1, 1], [], []>} : vector<8x8xf32>, vector<8x8xf32>, vector<8x8xf32> -> vector<8x8xf32>
    %52 = vector.extract_strided_slice %5 {offsets = [0, 16], sizes = [8, 8], strides = [1, 1]} : vector<16x32xf32> to vector<8x8xf32>
    %53 = vector.extract_strided_slice %11 {offsets = [0, 16], sizes = [8, 8], strides = [1, 1]} : vector<16x32xf32> to vector<8x8xf32>
    %54 = vector.extract_strided_slice %17 {offsets = [0, 16], sizes = [8, 8], strides = [1, 1]} : vector<16x32xf32> to vector<8x8xf32>
    %cst_34 = arith.constant dense<0.000000e+00> : vector<8x8xf32>
    %55 = tpu.matmul %52, %53, %cst_34 {dimension_numbers = #tpu.dot_dimension_numbers<[1], [1], [0], [0], [0, 0, 1, 0], [], []>} : vector<8x8xf32>, vector<8x8xf32>, vector<8x8xf32> -> vector<8x8xf32>
    %cst_35 = arith.constant dense<0xFF800000> : vector<8xf32>
    %56 = vector.multi_reduction <maximumf>, %55, %cst_35 [1] : vector<8x8xf32> to vector<8xf32>
    %57 = vector.shape_cast %56 : vector<8xf32> to vector<8x1xf32>
    %58 = vector.broadcast %57 : vector<8x1xf32> to vector<8x8xf32>
    %59 = arith.subf %55, %58 : vector<8x8xf32>
    %60 = math.exp %59 : vector<8x8xf32>
    %cst_36 = arith.constant dense<0.000000e+00> : vector<8xf32>
    %61 = vector.multi_reduction <add>, %60, %cst_36 [1] : vector<8x8xf32> to vector<8xf32>
    %62 = vector.shape_cast %61 : vector<8xf32> to vector<8x1xf32>
    %63 = vector.broadcast %62 : vector<8x1xf32> to vector<8x8xf32>
    %64 = arith.divf %60, %63 : vector<8x8xf32>
    %c0_37 = arith.constant 0 : index
    %c2 = arith.constant 2 : index
    %c0_38 = arith.constant 0 : index
    %c0_39 = arith.constant 0 : index
    %65 = vector.load %arg10[%c0_37, %c2, %c0_38, %c0_39] : memref<2x4x8x8xf32, #tpu.memory_space<vmem>>, vector<1x1x8x8xf32>
    %66 = vector.shape_cast %65 : vector<1x1x8x8xf32> to vector<8x8xf32>
    %67 = vector.shape_cast %64 : vector<8x8xf32> to vector<1x1x8x8xf32>
    tpu.vector_store %arg10[%c0_37, %c2, %c0_38, %c0_39], %67 {strides = array<i32>} : memref<2x4x8x8xf32, #tpu.memory_space<vmem>>, vector<1x1x8x8xf32>,
    %cst_40 = arith.constant dense<0.000000e+00> : vector<8x8xf32>
    %68 = tpu.matmul %64, %54, %cst_40 {dimension_numbers = #tpu.dot_dimension_numbers<[1], [0], [0], [1], [0, 0, 1, 1], [], []>} : vector<8x8xf32>, vector<8x8xf32>, vector<8x8xf32> -> vector<8x8xf32>
    %69 = vector.extract_strided_slice %5 {offsets = [0, 24], sizes = [8, 8], strides = [1, 1]} : vector<16x32xf32> to vector<8x8xf32>
    %70 = vector.extract_strided_slice %11 {offsets = [0, 24], sizes = [8, 8], strides = [1, 1]} : vector<16x32xf32> to vector<8x8xf32>
    %71 = vector.extract_strided_slice %17 {offsets = [0, 24], sizes = [8, 8], strides = [1, 1]} : vector<16x32xf32> to vector<8x8xf32>
    %cst_41 = arith.constant dense<0.000000e+00> : vector<8x8xf32>
    %72 = tpu.matmul %69, %70, %cst_41 {dimension_numbers = #tpu.dot_dimension_numbers<[1], [1], [0], [0], [0, 0, 1, 0], [], []>} : vector<8x8xf32>, vector<8x8xf32>, vector<8x8xf32> -> vector<8x8xf32>
    %cst_42 = arith.constant dense<0xFF800000> : vector<8xf32>
    %73 = vector.multi_reduction <maximumf>, %72, %cst_42 [1] : vector<8x8xf32> to vector<8xf32>
    %74 = vector.shape_cast %73 : vector<8xf32> to vector<8x1xf32>
    %75 = vector.broadcast %74 : vector<8x1xf32> to vector<8x8xf32>
    %76 = arith.subf %72, %75 : vector<8x8xf32>
    %77 = math.exp %76 : vector<8x8xf32>
    %cst_43 = arith.constant dense<0.000000e+00> : vector<8xf32>
    %78 = vector.multi_reduction <add>, %77, %cst_43 [1] : vector<8x8xf32> to vector<8xf32>
    %79 = vector.shape_cast %78 : vector<8xf32> to vector<8x1xf32>
    %80 = vector.broadcast %79 : vector<8x1xf32> to vector<8x8xf32>
    %81 = arith.divf %77, %80 : vector<8x8xf32>
    %c0_44 = arith.constant 0 : index
    %c3 = arith.constant 3 : index
    %c0_45 = arith.constant 0 : index
    %c0_46 = arith.constant 0 : index
    %82 = vector.load %arg10[%c0_44, %c3, %c0_45, %c0_46] : memref<2x4x8x8xf32, #tpu.memory_space<vmem>>, vector<1x1x8x8xf32>
    %83 = vector.shape_cast %82 : vector<1x1x8x8xf32> to vector<8x8xf32>
    %84 = vector.shape_cast %81 : vector<8x8xf32> to vector<1x1x8x8xf32>
    tpu.vector_store %arg10[%c0_44, %c3, %c0_45, %c0_46], %84 {strides = array<i32>} : memref<2x4x8x8xf32, #tpu.memory_space<vmem>>, vector<1x1x8x8xf32>,
    %cst_47 = arith.constant dense<0.000000e+00> : vector<8x8xf32>
    %85 = tpu.matmul %81, %71, %cst_47 {dimension_numbers = #tpu.dot_dimension_numbers<[1], [0], [0], [1], [0, 0, 1, 1], [], []>} : vector<8x8xf32>, vector<8x8xf32>, vector<8x8xf32> -> vector<8x8xf32>
    %86 = tpu.concatenate %34, %51, %68, %85 in 1 : vector<8x8xf32>, vector<8x8xf32>, vector<8x8xf32>, vector<8x8xf32> -> vector<8x32xf32>
    %c0_48 = arith.constant 0 : index
    %c0_49 = arith.constant 0 : index
    %c0_50 = arith.constant 0 : index
    %87 = vector.load %arg9[%c0_48, %c0_49, %c0_50] : memref<2x8x32xf32, #tpu.memory_space<vmem>>, vector<1x8x32xf32>
    %88 = vector.shape_cast %87 : vector<1x8x32xf32> to vector<8x32xf32>
    %89 = vector.shape_cast %86 : vector<8x32xf32> to vector<1x8x32xf32>
    tpu.vector_store %arg9[%c0_48, %c0_49, %c0_50], %89 {strides = array<i32>} : memref<2x8x32xf32, #tpu.memory_space<vmem>>, vector<1x8x32xf32>,
    %90 = vector.extract_strided_slice %5 {offsets = [8, 0], sizes = [8, 8], strides = [1, 1]} : vector<16x32xf32> to vector<8x8xf32>
    %91 = vector.extract_strided_slice %11 {offsets = [8, 0], sizes = [8, 8], strides = [1, 1]} : vector<16x32xf32> to vector<8x8xf32>
    %92 = vector.extract_strided_slice %17 {offsets = [8, 0], sizes = [8, 8], strides = [1, 1]} : vector<16x32xf32> to vector<8x8xf32>
    %cst_51 = arith.constant dense<0.000000e+00> : vector<8x8xf32>
    %93 = tpu.matmul %90, %91, %cst_51 {dimension_numbers = #tpu.dot_dimension_numbers<[1], [1], [0], [0], [0, 0, 1, 0], [], []>} : vector<8x8xf32>, vector<8x8xf32>, vector<8x8xf32> -> vector<8x8xf32>
    %cst_52 = arith.constant dense<0xFF800000> : vector<8xf32>
    %94 = vector.multi_reduction <maximumf>, %93, %cst_52 [1] : vector<8x8xf32> to vector<8xf32>
    %95 = vector.shape_cast %94 : vector<8xf32> to vector<8x1xf32>
    %96 = vector.broadcast %95 : vector<8x1xf32> to vector<8x8xf32>
    %97 = arith.subf %93, %96 : vector<8x8xf32>
    %98 = math.exp %97 : vector<8x8xf32>
    %cst_53 = arith.constant dense<0.000000e+00> : vector<8xf32>
    %99 = vector.multi_reduction <add>, %98, %cst_53 [1] : vector<8x8xf32> to vector<8xf32>
    %100 = vector.shape_cast %99 : vector<8xf32> to vector<8x1xf32>
    %101 = vector.broadcast %100 : vector<8x1xf32> to vector<8x8xf32>
    %102 = arith.divf %98, %101 : vector<8x8xf32>
    %c1_54 = arith.constant 1 : index
    %c0_55 = arith.constant 0 : index
    %c0_56 = arith.constant 0 : index
    %c0_57 = arith.constant 0 : index
    %103 = vector.load %arg10[%c1_54, %c0_55, %c0_56, %c0_57] : memref<2x4x8x8xf32, #tpu.memory_space<vmem>>, vector<1x1x8x8xf32>
    %104 = vector.shape_cast %103 : vector<1x1x8x8xf32> to vector<8x8xf32>
    %105 = vector.shape_cast %102 : vector<8x8xf32> to vector<1x1x8x8xf32>
    tpu.vector_store %arg10[%c1_54, %c0_55, %c0_56, %c0_57], %105 {strides = array<i32>} : memref<2x4x8x8xf32, #tpu.memory_space<vmem>>, vector<1x1x8x8xf32>,
    %cst_58 = arith.constant dense<0.000000e+00> : vector<8x8xf32>
    %106 = tpu.matmul %102, %92, %cst_58 {dimension_numbers = #tpu.dot_dimension_numbers<[1], [0], [0], [1], [0, 0, 1, 1], [], []>} : vector<8x8xf32>, vector<8x8xf32>, vector<8x8xf32> -> vector<8x8xf32>
    %107 = vector.extract_strided_slice %5 {offsets = [8, 8], sizes = [8, 8], strides = [1, 1]} : vector<16x32xf32> to vector<8x8xf32>
    %108 = vector.extract_strided_slice %11 {offsets = [8, 8], sizes = [8, 8], strides = [1, 1]} : vector<16x32xf32> to vector<8x8xf32>
    %109 = vector.extract_strided_slice %17 {offsets = [8, 8], sizes = [8, 8], strides = [1, 1]} : vector<16x32xf32> to vector<8x8xf32>
    %cst_59 = arith.constant dense<0.000000e+00> : vector<8x8xf32>
    %110 = tpu.matmul %107, %108, %cst_59 {dimension_numbers = #tpu.dot_dimension_numbers<[1], [1], [0], [0], [0, 0, 1, 0], [], []>} : vector<8x8xf32>, vector<8x8xf32>, vector<8x8xf32> -> vector<8x8xf32>
    %cst_60 = arith.constant dense<0xFF800000> : vector<8xf32>
    %111 = vector.multi_reduction <maximumf>, %110, %cst_60 [1] : vector<8x8xf32> to vector<8xf32>
    %112 = vector.shape_cast %111 : vector<8xf32> to vector<8x1xf32>
    %113 = vector.broadcast %112 : vector<8x1xf32> to vector<8x8xf32>
    %114 = arith.subf %110, %113 : vector<8x8xf32>
    %115 = math.exp %114 : vector<8x8xf32>
    %cst_61 = arith.constant dense<0.000000e+00> : vector<8xf32>
    %116 = vector.multi_reduction <add>, %115, %cst_61 [1] : vector<8x8xf32> to vector<8xf32>
    %117 = vector.shape_cast %116 : vector<8xf32> to vector<8x1xf32>
    %118 = vector.broadcast %117 : vector<8x1xf32> to vector<8x8xf32>
    %119 = arith.divf %115, %118 : vector<8x8xf32>
    %c1_62 = arith.constant 1 : index
    %c1_63 = arith.constant 1 : index
    %c0_64 = arith.constant 0 : index
    %c0_65 = arith.constant 0 : index
    %120 = vector.load %arg10[%c1_62, %c1_63, %c0_64, %c0_65] : memref<2x4x8x8xf32, #tpu.memory_space<vmem>>, vector<1x1x8x8xf32>
    %121 = vector.shape_cast %120 : vector<1x1x8x8xf32> to vector<8x8xf32>
    %122 = vector.shape_cast %119 : vector<8x8xf32> to vector<1x1x8x8xf32>
    tpu.vector_store %arg10[%c1_62, %c1_63, %c0_64, %c0_65], %122 {strides = array<i32>} : memref<2x4x8x8xf32, #tpu.memory_space<vmem>>, vector<1x1x8x8xf32>,
    %cst_66 = arith.constant dense<0.000000e+00> : vector<8x8xf32>
    %123 = tpu.matmul %119, %109, %cst_66 {dimension_numbers = #tpu.dot_dimension_numbers<[1], [0], [0], [1], [0, 0, 1, 1], [], []>} : vector<8x8xf32>, vector<8x8xf32>, vector<8x8xf32> -> vector<8x8xf32>
    %124 = vector.extract_strided_slice %5 {offsets = [8, 16], sizes = [8, 8], strides = [1, 1]} : vector<16x32xf32> to vector<8x8xf32>
    %125 = vector.extract_strided_slice %11 {offsets = [8, 16], sizes = [8, 8], strides = [1, 1]} : vector<16x32xf32> to vector<8x8xf32>
    %126 = vector.extract_strided_slice %17 {offsets = [8, 16], sizes = [8, 8], strides = [1, 1]} : vector<16x32xf32> to vector<8x8xf32>
    %cst_67 = arith.constant dense<0.000000e+00> : vector<8x8xf32>
    %127 = tpu.matmul %124, %125, %cst_67 {dimension_numbers = #tpu.dot_dimension_numbers<[1], [1], [0], [0], [0, 0, 1, 0], [], []>} : vector<8x8xf32>, vector<8x8xf32>, vector<8x8xf32> -> vector<8x8xf32>
    %cst_68 = arith.constant dense<0xFF800000> : vector<8xf32>
    %128 = vector.multi_reduction <maximumf>, %127, %cst_68 [1] : vector<8x8xf32> to vector<8xf32>
    %129 = vector.shape_cast %128 : vector<8xf32> to vector<8x1xf32>
    %130 = vector.broadcast %129 : vector<8x1xf32> to vector<8x8xf32>
    %131 = arith.subf %127, %130 : vector<8x8xf32>
    %132 = math.exp %131 : vector<8x8xf32>
    %cst_69 = arith.constant dense<0.000000e+00> : vector<8xf32>
    %133 = vector.multi_reduction <add>, %132, %cst_69 [1] : vector<8x8xf32> to vector<8xf32>
    %134 = vector.shape_cast %133 : vector<8xf32> to vector<8x1xf32>
    %135 = vector.broadcast %134 : vector<8x1xf32> to vector<8x8xf32>
    %136 = arith.divf %132, %135 : vector<8x8xf32>
    %c1_70 = arith.constant 1 : index
    %c2_71 = arith.constant 2 : index
    %c0_72 = arith.constant 0 : index
    %c0_73 = arith.constant 0 : index
    %137 = vector.load %arg10[%c1_70, %c2_71, %c0_72, %c0_73] : memref<2x4x8x8xf32, #tpu.memory_space<vmem>>, vector<1x1x8x8xf32>
    %138 = vector.shape_cast %137 : vector<1x1x8x8xf32> to vector<8x8xf32>
    %139 = vector.shape_cast %136 : vector<8x8xf32> to vector<1x1x8x8xf32>
    tpu.vector_store %arg10[%c1_70, %c2_71, %c0_72, %c0_73], %139 {strides = array<i32>} : memref<2x4x8x8xf32, #tpu.memory_space<vmem>>, vector<1x1x8x8xf32>,
    %cst_74 = arith.constant dense<0.000000e+00> : vector<8x8xf32>
    %140 = tpu.matmul %136, %126, %cst_74 {dimension_numbers = #tpu.dot_dimension_numbers<[1], [0], [0], [1], [0, 0, 1, 1], [], []>} : vector<8x8xf32>, vector<8x8xf32>, vector<8x8xf32> -> vector<8x8xf32>
    %141 = vector.extract_strided_slice %5 {offsets = [8, 24], sizes = [8, 8], strides = [1, 1]} : vector<16x32xf32> to vector<8x8xf32>
    %142 = vector.extract_strided_slice %11 {offsets = [8, 24], sizes = [8, 8], strides = [1, 1]} : vector<16x32xf32> to vector<8x8xf32>
    %143 = vector.extract_strided_slice %17 {offsets = [8, 24], sizes = [8, 8], strides = [1, 1]} : vector<16x32xf32> to vector<8x8xf32>
    %cst_75 = arith.constant dense<0.000000e+00> : vector<8x8xf32>
    %144 = tpu.matmul %141, %142, %cst_75 {dimension_numbers = #tpu.dot_dimension_numbers<[1], [1], [0], [0], [0, 0, 1, 0], [], []>} : vector<8x8xf32>, vector<8x8xf32>, vector<8x8xf32> -> vector<8x8xf32>
    %cst_76 = arith.constant dense<0xFF800000> : vector<8xf32>
    %145 = vector.multi_reduction <maximumf>, %144, %cst_76 [1] : vector<8x8xf32> to vector<8xf32>
    %146 = vector.shape_cast %145 : vector<8xf32> to vector<8x1xf32>
    %147 = vector.broadcast %146 : vector<8x1xf32> to vector<8x8xf32>
    %148 = arith.subf %144, %147 : vector<8x8xf32>
    %149 = math.exp %148 : vector<8x8xf32>
    %cst_77 = arith.constant dense<0.000000e+00> : vector<8xf32>
    %150 = vector.multi_reduction <add>, %149, %cst_77 [1] : vector<8x8xf32> to vector<8xf32>
    %151 = vector.shape_cast %150 : vector<8xf32> to vector<8x1xf32>
    %152 = vector.broadcast %151 : vector<8x1xf32> to vector<8x8xf32>
    %153 = arith.divf %149, %152 : vector<8x8xf32>
    %c1_78 = arith.constant 1 : index
    %c3_79 = arith.constant 3 : index
    %c0_80 = arith.constant 0 : index
    %c0_81 = arith.constant 0 : index
    %154 = vector.load %arg10[%c1_78, %c3_79, %c0_80, %c0_81] : memref<2x4x8x8xf32, #tpu.memory_space<vmem>>, vector<1x1x8x8xf32>
    %155 = vector.shape_cast %154 : vector<1x1x8x8xf32> to vector<8x8xf32>
    %156 = vector.shape_cast %153 : vector<8x8xf32> to vector<1x1x8x8xf32>
    tpu.vector_store %arg10[%c1_78, %c3_79, %c0_80, %c0_81], %156 {strides = array<i32>} : memref<2x4x8x8xf32, #tpu.memory_space<vmem>>, vector<1x1x8x8xf32>,
    %cst_82 = arith.constant dense<0.000000e+00> : vector<8x8xf32>
    %157 = tpu.matmul %153, %143, %cst_82 {dimension_numbers = #tpu.dot_dimension_numbers<[1], [0], [0], [1], [0, 0, 1, 1], [], []>} : vector<8x8xf32>, vector<8x8xf32>, vector<8x8xf32> -> vector<8x8xf32>
    %158 = tpu.concatenate %106, %123, %140, %157 in 1 : vector<8x8xf32>, vector<8x8xf32>, vector<8x8xf32>, vector<8x8xf32> -> vector<8x32xf32>
    %c1_83 = arith.constant 1 : index
    %c0_84 = arith.constant 0 : index
    %c0_85 = arith.constant 0 : index
    %159 = vector.load %arg9[%c1_83, %c0_84, %c0_85] : memref<2x8x32xf32, #tpu.memory_space<vmem>>, vector<1x8x32xf32>
    %160 = vector.shape_cast %159 : vector<1x8x32xf32> to vector<8x32xf32>
    %161 = vector.shape_cast %158 : vector<8x32xf32> to vector<1x8x32xf32>
    tpu.vector_store %arg9[%c1_83, %c0_84, %c0_85], %161 {strides = array<i32>} : memref<2x8x32xf32, #tpu.memory_space<vmem>>, vector<1x8x32xf32>,
    return
  }
}

</mosaic_0001>

<bundles_post_ra>
// kernel: tpu_custom_call.1
= control target key start
LH: loop header
LB: loop body
LE: loop exit
PB: predicated region body
PF: predicated region fallthrough
CT: control target
= control target key end

     0   :  { %16 = vsyncpa [#allocation3], 0  ;;  %s2631_s0 = inlined_call_operand.hbm [shape: f32[16,32], index: 0, kind: input, shape index: {}]   ;;  %s2632_s1 = inlined_call_operand.hbm [shape: f32[16,32], index: 1, kind: input, shape index: {}]   ;;  %s2633_s2 = inlined_call_operand.hbm [shape: f32[16,32], index: 2, kind: input, shape index: {}]   ;;  %s2634_s3 = inlined_call_operand.hbm [shape: f32[32,32], index: 3, kind: input, shape index: {}]   ;;  %s2635_s4 = inlined_call_operand.vmem [shape: f32[1,32], index: 4, kind: input, shape index: {}]   ;;  %s2636_s5 = inlined_call_operand.hbm [shape: f32[32,32], index: 5, kind: input, shape index: {}]   ;;  %s2637_s6 = inlined_call_operand.vmem [shape: f32[1,32], index: 6, kind: input, shape index: {}]   ;;  %s2638_s7 = inlined_call_operand.hbm [shape: f32[32,32], index: 7, kind: input, shape index: {}]   ;;  %s2639_s8 = inlined_call_operand.vmem [shape: f32[1,32], index: 8, kind: input, shape index: {}]   ;;  %s2640_s9 = inlined_call_operand.hbm [shape: f32[2,8,32], index: 9, kind: output, shape index: {0}]   ;;  %s2641_s10 = inlined_call_operand.hbm [shape: f32[2,4,8,8], index: 10, kind: output, shape index: {1}]  }
   0x1   :  { %17 = vsyncpa [#allocation6], 0 }
   0x2   :  { %18 = vsyncpa [#allocation9], 0 }
   0x3   :  { %19 = vsyncpa [#allocation12], 0 }
   0x4   :  { %20 = vsyncpa [#allocation4], 0 }
   0x5   :  { %21 = vsyncpa [#allocation15], 0  ;;  %s2257_s13 = smov [#allocation5]   ;;  %s2258_s15 = smov [#allocation8]  }
   0x6   :  { %s39_s14 = sshll.u32 %s2257_s13, 4  ;;  %s63_s16 = sshll.u32 %s2258_s15, 4  ;;  %s40_s14 = int_to_ptr.vmem [resolvable:$true] %s39_s14  ;;  %s2329_s16 = int_to_ptr.vmem [resolvable:$true] %s63_s16 }
   0x7   :  { %s2069_s19 = scalar_lea.hbm %s2632_s1, 256 }
   0x8   :  { %p2070_p0 = scmp.ne.s32.totalorder %s2632_s1, %s2069_s19  ;;  %p2073_p1 = scmp.lt.u32.totalorder %s2069_s19, %s2632_s1 }
   0xa   :  { %p2075_p2 = pnand %p2073_p1, %p2070_p0 }
   0xc   :  { %2078 = shalt.err (!%p2075_p2)
}
   0xd   :  { %s2079_s24 = scalar_lea.vmem %s40_s14, 256  ;;  %p2084_p4 = scmp.lt.s32.totalorder %s40_s14, %s40_s14 }
   0xe   :  { %p2080_p3 = scmp.ne.s32.totalorder %s40_s14, %s2079_s24  ;;  %p2085_p5 = scmp.lt.s32.totalorder %s2079_s24, %s2079_s24 }
  0x10   :  { %p2086_p6 = por %p2085_p5, %p2084_p4 }
  0x12   :  { %p2087_p7 = pnand %p2086_p6, %p2080_p3 }
  0x14   :  { %2090 = shalt.err (!%p2087_p7)
}
  0x15   :  { %s2259_s25 = smov 128   ;;  %s2260_s26 = smov 8  }
  0x16   :  { %45 = dma.hbm_to_vmem [thread:$0]  %s2632_s1, 256, %s40_s14, [#allocation6], %s2259_s25, %s2259_s25, %s2260_s26  }
  0x17   :  { %s2091_s11 = scalar_lea.hbm %s2634_s3, 512 }
  0x18   :  { %p2092_p8 = scmp.ne.s32.totalorder %s2634_s3, %s2091_s11  ;;  %p2095_p9 = scmp.lt.u32.totalorder %s2091_s11, %s2634_s3 }
  0x1a   :  { %p2097_p10 = pnand %p2095_p9, %p2092_p8 }
  0x1c   :  { %2100 = shalt.err (!%p2097_p10)
}
  0x1d   :  { %s2101_s18 = scalar_lea.vmem %s2329_s16, 512  ;;  %p2106_p12 = scmp.lt.s32.totalorder %s2329_s16, %s2329_s16 }
  0x1e   :  { %p2102_p11 = scmp.ne.s32.totalorder %s2329_s16, %s2101_s18  ;;  %p2107_p13 = scmp.lt.s32.totalorder %s2101_s18, %s2101_s18 }
  0x20   :  { %p2108_p0 = por %p2107_p13, %p2106_p12 }
  0x22   :  { %p2109_p1 = pnand %p2108_p0, %p2102_p11 }
  0x24   :  { %2112 = shalt.err (!%p2109_p1)
}
  0x25   :  { %69 = dma.hbm_to_vmem [thread:$0]  %s2634_s3, 512, %s2329_s16, [#allocation9], %s2259_s25, %s2259_s25, %s2260_s26  }
  0x26   :  { %s2261_s19 = smov [#allocation2]   ;;  %s2262_s21 = smov [#allocation7]  }
  0x27   :  { %s27_s20 = sshll.u32 %s2261_s19, 4  ;;  %s51_s22 = sshll.u32 %s2262_s21, 4  ;;  %s28_s20 = int_to_ptr.vmem [resolvable:$true] %s27_s20  ;;  %s2366_s22 = int_to_ptr.vmem [resolvable:$true] %s51_s22 }
  0x28   :  { %s2113_s27 = scalar_lea.hbm %s2631_s0, 256 }
  0x29   :  { %p2114_p2 = scmp.ne.s32.totalorder %s2631_s0, %s2113_s27  ;;  %p2117_p3 = scmp.lt.u32.totalorder %s2113_s27, %s2631_s0 }
  0x2b   :  { %p2119_p4 = pnand %p2117_p3, %p2114_p2 }
  0x2d   :  { %2122 = shalt.err (!%p2119_p4)
}
  0x2e   :  { %s2123_s3 = scalar_lea.vmem %s28_s20, 256  ;;  %p2128_p6 = scmp.lt.s32.totalorder %s28_s20, %s28_s20 }
  0x2f   :  { %p2124_p5 = scmp.ne.s32.totalorder %s28_s20, %s2123_s3  ;;  %p2129_p7 = scmp.lt.s32.totalorder %s2123_s3, %s2123_s3 }
  0x31   :  { %p2130_p8 = por %p2129_p7, %p2128_p6 }
  0x33   :  { %p2131_p9 = pnand %p2130_p8, %p2124_p5 }
  0x35   :  { %2134 = shalt.err (!%p2131_p9)
}
  0x36   :  { %33 = dma.hbm_to_vmem [thread:$0]  %s2631_s0, 256, %s28_s20, [#allocation3], %s2259_s25, %s2259_s25, %s2260_s26  }
  0x37   :  { %s2135_s17 = scalar_lea.hbm %s2633_s2, 256 }
  0x38   :  { %p2136_p10 = scmp.ne.s32.totalorder %s2633_s2, %s2135_s17  ;;  %p2139_p11 = scmp.lt.u32.totalorder %s2135_s17, %s2633_s2 }
  0x3a   :  { %p2141_p12 = pnand %p2139_p11, %p2136_p10 }
  0x3c   :  { %2144 = shalt.err (!%p2141_p12)
}
  0x3d   :  { %s2145_s21 = scalar_lea.vmem %s2366_s22, 256  ;;  %p2150_p0 = scmp.lt.s32.totalorder %s2366_s22, %s2366_s22 }
  0x3e   :  { %p2146_p13 = scmp.ne.s32.totalorder %s2366_s22, %s2145_s21  ;;  %p2151_p1 = scmp.lt.s32.totalorder %s2145_s21, %s2145_s21 }
  0x40   :  { %p2152_p2 = por %p2151_p1, %p2150_p0 }
  0x42   :  { %p2153_p3 = pnand %p2152_p2, %p2146_p13 }
  0x44   :  { %2156 = shalt.err (!%p2153_p3)
}
  0x45   :  { %57 = dma.hbm_to_vmem [thread:$0]  %s2633_s2, 256, %s2366_s22, [#allocation6], %s2259_s25, %s2259_s25, %s2260_s26  }
  0x46   :  { %s2263_s23 = smov [#allocation10]   ;;  %s2264_s27 = smov [#allocation11]  }
  0x47   :  { %s77_s24 = sshll.u32 %s2263_s23, 4  ;;  %s91_s28 = sshll.u32 %s2264_s27, 4  ;;  %s78_s24 = int_to_ptr.vmem [resolvable:$true] %s77_s24  ;;  %s2403_s28 = int_to_ptr.vmem [resolvable:$true] %s91_s28 }
  0x48   :  { %s2157_s11 = scalar_lea.hbm %s2636_s5, 512 }
  0x49   :  { %p2158_p4 = scmp.ne.s32.totalorder %s2636_s5, %s2157_s11  ;;  %p2161_p5 = scmp.lt.u32.totalorder %s2157_s11, %s2636_s5 }
  0x4b   :  { %p2163_p6 = pnand %p2161_p5, %p2158_p4 }
  0x4d   :  { %2166 = shalt.err (!%p2163_p6)
}
  0x4e   :  { %s2167_s2 = scalar_lea.vmem %s78_s24, 512  ;;  %p2172_p8 = scmp.lt.s32.totalorder %s78_s24, %s78_s24 }
  0x4f   :  { %p2168_p7 = scmp.ne.s32.totalorder %s78_s24, %s2167_s2  ;;  %p2173_p9 = scmp.lt.s32.totalorder %s2167_s2, %s2167_s2 }
  0x51   :  { %p2174_p10 = por %p2173_p9, %p2172_p8 }
  0x53   :  { %p2175_p11 = pnand %p2174_p10, %p2168_p7 }
  0x55   :  { %2178 = shalt.err (!%p2175_p11)
}
  0x56   :  { %83 = dma.hbm_to_vmem [thread:$0]  %s2636_s5, 512, %s78_s24, [#allocation9], %s2259_s25, %s2259_s25, %s2260_s26  }
  0x57   :  { %s2179_s1 = scalar_lea.hbm %s2638_s7, 512 }
  0x58   :  { %p2180_p12 = scmp.ne.s32.totalorder %s2638_s7, %s2179_s1  ;;  %p2183_p13 = scmp.lt.u32.totalorder %s2179_s1, %s2638_s7 }
  0x5a   :  { %p2185_p0 = pnand %p2183_p13, %p2180_p12 }
  0x5c   :  { %2188 = shalt.err (!%p2185_p0)
}
  0x5d   :  { %s2189_s20 = scalar_lea.vmem %s2403_s28, 512  ;;  %p2194_p2 = scmp.lt.s32.totalorder %s2403_s28, %s2403_s28 }
  0x5e   :  { %p2190_p1 = scmp.ne.s32.totalorder %s2403_s28, %s2189_s20  ;;  %p2195_p3 = scmp.lt.s32.totalorder %s2189_s20, %s2189_s20 }
  0x60   :  { %p2196_p4 = por %p2195_p3, %p2194_p2 }
  0x62   :  { %p2197_p5 = pnand %p2196_p4, %p2190_p1 }
  0x64   :  { %2200 = shalt.err (!%p2197_p5)
}
  0x65   :  { %97 = dma.hbm_to_vmem [thread:$0]  %s2638_s7, 512, %s2403_s28, [#allocation12], %s2259_s25, %s2259_s25, %s2260_s26  }
  0x66   :  { %2245 = dma.done.wait [#allocation3], 256  }
  0x67   :  { %2246 = vsyncadd [#allocation3], 4294967040 }
  0x68   :  { %2247 = dma.done.wait [#allocation6], 512  }
  0x69   :  { %2248 = vsyncadd [#allocation6], 4294966784 }
  0x6a   :  { %2249 = dma.done.wait [#allocation9], 1024  }
  0x6b   :  { %2250 = vsyncadd [#allocation9], 4294966272 }
  0x6c   :  { %2251 = dma.done.wait [#allocation12], 512  }
  0x6d   :  { %2252 = vsyncadd [#allocation12], 4294966784  ;;  %v215_v0 = vld [vmem:[#allocation10] sm:$0xff]  ;;  %v216_v1 = vld [vmem:[#allocation10 + $0x8] sm:$0xff]  ;;  %vm131_vm0 = vcmask 261120   ;;  %v2265_v16 = vmov 0.0  }
  0x6e   :  { %v120_v2 = vld [vmem:[#allocation8] sm:$0xff]  ;;  %v2004_v3 = vpack.c.bf16 %v216_v1, %v215_v0  ;;  %v121_v4 = vld [vmem:[#allocation8 + $0x8] sm:$0xff]  ;;  %v217_v5 = vld [vmem:[#allocation10 + $0x10] sm:$0xff]  ;;  %vm2266_vm1 = vmmov 0   ;;  %vm401_vm2 = vcmask 64512   ;;  %s2267_s29 = smov 112  }
  0x6f   :  { %v218_v6 = vld [vmem:[#allocation10 + $0x18] sm:$0xff]  ;;  %v1996_v7 = vpack.c.bf16 %v121_v4, %v120_v2  ;;  %v122_v9 = vld [vmem:[#allocation8 + $0x10] sm:$0xff]  ;;  %v213_v11 = vld [vmem:[#allocation5] sm:$0xff]  ;;  %s2268_s30 = smov 120   ;;  %s2271_s3 = smov 24  }
  0x70   :  { %v2008_v8 = vpack.c.bf16 %v218_v6, %v217_v5  ;;  %v123_v10 = vld [vmem:[#allocation8 + $0x18] sm:$0xff]  ;;  %2005 = vmatprep.subr.bf16.mxu1 %v2004_v3  ;;  %1902 = vmatprep.mubr.msk.f32.mxu1 %vm131_vm0, %v213_v11  ;;  %v118_v13 = vld [vmem:[#allocation2] sm:$0xff]  ;;  %v214_v14 = vld [vmem:[#allocation5 + $0x8] sm:$0xff]  ;;  %s2272_s16 = smov [#allocation14]  }
  0x71   :  { %v2000_v12 = vpack.c.bf16 %v123_v10, %v122_v9  ;;  %2007 = vmatpush3.bf16.msra.mxu1 %v2004_v3  ;;  %1997 = vmatprep.subr.bf16.mxu0 %v1996_v7  ;;  %v119_v15 = vld [vmem:[#allocation2 + $0x8] sm:$0xff]  ;;  %v309_v17 = vld [vmem:[#allocation11] sm:$0xff]  ;;  %v310_v18 = vld [vmem:[#allocation11 + $0x8] sm:$0xff]  ;;  %s1781_s12 = sshll.u32 %s2272_s16, 4  ;;  %s1782_s12 = int_to_ptr.vmem [resolvable:$true] %s1781_s12 }
  0x72   :  { %1999 = vmatpush3.bf16.msra.mxu0 %v1996_v7  ;;  %2009 = vmatprep.subr.bf16.mxu1 %v2008_v8  ;;  %v311_v19 = vld [vmem:[#allocation11 + $0x10] sm:$0xff]  ;;  %v2012_v20 = vpack.c.bf16 %v310_v18, %v309_v17  ;;  %v312_v21 = vld [vmem:[#allocation11 + $0x18] sm:$0xff]  ;;  %s2201_s13 = scalar_lea.vmem %s1782_s12, 1024  ;;  %p2206_p7 = scmp.lt.s32.totalorder %s1782_s12, %s1782_s12 }
  0x73   :  { %2001 = vmatprep.subr.bf16.mxu0 %v2000_v12  ;;  %1891 = vmatprep.mubr.msk.f32.mxu0 %vm131_vm0, %v118_v13  ;;  %v307_v22 = vld [vmem:[#allocation7] sm:$0xff]  ;;  %v2016_v23 = vpack.c.bf16 %v312_v21, %v311_v19  ;;  %v308_v24 = vld [vmem:[#allocation7 + $0x8] sm:$0xff]  ;;  %p2202_p6 = scmp.ne.s32.totalorder %s1782_s12, %s2201_s13  ;;  %p2207_p8 = scmp.lt.s32.totalorder %s2201_s13, %s2201_s13 }
  0x74   :  { %v1803_v25 = vld [vmem:[%s2637_s6] ss:$0 sm:$0xff] }
  0x75   :  { %2011 = vmatpush3.bf16.msra.mxu1 %v2008_v8  ;;  %v1800_v29 = vld [vmem:[%s2635_s4] ss:$0 sm:$0xff]  ;;  %s2269_s4 = smov 104   ;;  %p2208_p9 = por %p2207_p8, %p2206_p7 }
  0x76   :  { %2003 = vmatpush3.bf16.msra.mxu0 %v2000_v12  ;;  %1916 = vmatprep.subr.mxu1 %v2265_v16  ;;  %v1806_v47 = vld [vmem:[%s2639_s8] ss:$0 sm:$0xff]  ;;  %s2270_s8 = smov 16  }
  0x77   :  { %2013 = vmatprep.subr.bf16.mxu0 %v2012_v20  ;;  %p2209_p10 = pnand %p2208_p9, %p2202_p6 }
  0x78   :  { %1903 = vmatmul.mubr.msk.f32.vlgmr.msra.gmra.mrb[0].mxu1 %vm131_vm0, %v214_v14 }
  0x79   :  { %1892 = vmatmul.mubr.msk.f32.vlgmr.msra.gmra.mrb[0].mxu0 %vm131_vm0, %v119_v15  ;;  %1918 = vmatprep.mubr.msk.f32.mxu1 %vm2266_vm1, %v2265_v16 }
  0x7a   :  { %1913 = vmatprep.mubr.msk.f32.mxu0 %vm131_vm0, %v307_v22  ;;  %2015 = vmatpush3.bf16.msra.mxu0 %v2012_v20 }
  0x7b   :  { %2017 = vmatprep.subr.bf16.mxu0 %v2016_v23 }
  0x7e   :  { %2019 = vmatpush3.bf16.msra.mxu0 %v2016_v23 }
  0x7f   :  { %1926 = vmatprep.subr.mxu0 %v2265_v16 }
  0x81   :  { %1914 = vmatmul.mubr.msk.f32.vlgmr.msra.gmra.mrb[2].mxu0 %vm131_vm0, %v308_v24 }
  0x82   :  { %1928 = vmatprep.mubr.msk.f32.mxu0 %vm2266_vm1, %v2265_v16 }
 0x14b   :  { %v1904_v26 = vpop.f32.mrb[0].mxu1 }
 0x14c   :  { %v298_v27 = vpop.f32.mrb[1].mxu1  ;;  %v1893_v28 = vpop.f32.mrb[0].mxu0  ;;  %v304_v34 = vadd.f32 %v1904_v26, %v1803_v25 }
 0x14d   :  { %v299_v30 = vadd.f32 %v1803_v25, %v298_v27  ;;  %v204_v31 = vpop.f32.mrb[1].mxu0  ;;  %v210_v33 = vadd.f32 %v1893_v28, %v1800_v29 }
 0x14e   :  { %v205_v32 = vadd.f32 %v1800_v29, %v204_v31 }
 0x14f   :  { %733 = vrot.lane.b32.xlu1 %v299_v30, %s2267_s29  ;;  %565 = vrot.lane.b32.xlu0 %v299_v30, %s2268_s30 }
 0x150   :  { %1917 = vmatpush3.xpose.msk.msra.mxu1 %vm401_vm2, %v299_v30 }
 0x151   :  { %1921 = vmatprep.subr.mxu1 %v2265_v16 }
 0x153   :  { %1919 = vmatmul.mubr.msk.f32.vlgmr.msra.gmra.mrb[2].mxu1 %vm401_vm2, %v205_v32  ;;  %731 = vrot.lane.b32.xlu1 %v205_v32, %s2267_s29 }
 0x154   :  { %563 = vrot.lane.b32.xlu0 %v205_v32, %s2268_s30  ;;  %1923 = vmatprep.mubr.msk.f32.mxu1 %vm2266_vm1, %v2265_v16  ;;  %v1915_v48 = vpop.f32.mrb[2].mxu0 }
 0x155   :  { %v2510_v49 = vadd.f32 %v1915_v48, %v1806_v47  ;;  %v392_v50 = vpop.f32.mrb[3].mxu0 }
 0x156   :  { %v393_v51 = vadd.f32 %v1806_v47, %v392_v50 }
 0x157   :  { %898 = vrot.lane.b32.xlu1 %v205_v32, %s2269_s4 }
 0x158   :  { %900 = vrot.lane.b32.xlu0 %v299_v30, %s2269_s4  ;;  %1922 = vmatpush3.msra.mxu1 %v393_v51 }
 0x159   :  { %1931 = vmatprep.subr.mxu1 %v2265_v16 }
 0x15b   :  { %1245 = vrot.lane.b32.xlu1 %v210_v33, %s2268_s30 }
 0x15c   :  { %1247 = vrot.lane.b32.xlu0 %v304_v34, %s2268_s30 }
 0x15f   :  { %1413 = vrot.lane.b32.xlu1 %v210_v33, %s2267_s29 }
 0x160   :  { %1415 = vrot.lane.b32.xlu0 %v304_v34, %s2267_s29 }
 0x163   :  { %1580 = vrot.lane.b32.xlu1 %v210_v33, %s2269_s4 }
 0x164   :  { %1582 = vrot.lane.b32.xlu0 %v304_v34, %s2269_s4 }
 0x1c1   :  { %v734_v35 = vpop.permute.xlu1 %733  ;;  %v566_v36 = vpop.permute.xlu0 %565 }
 0x1c2   :  { %1927 = vmatpush3.xpose.msk.msra.mxu0 %vm401_vm2, %v566_v36 }
 0x1c3   :  { %1936 = vmatprep.subr.mxu0 %v2265_v16 }
 0x1c5   :  { %v732_v37 = vpop.permute.xlu1 %731 }
 0x1c6   :  { %v564_v38 = vpop.permute.xlu0 %563 }
 0x1c7   :  { %1929 = vmatmul.mubr.msk.f32.vlgmr.msra.gmra.mrb[4].mxu0 %vm401_vm2, %v564_v38 }
 0x1c8   :  { %1937 = vmatpush3.xpose.msk.msra.mxu0 %vm401_vm2, %v734_v35  ;;  %1938 = vmatprep.mubr.msk.f32.mxu0 %vm2266_vm1, %v2265_v16 }
 0x1c9   :  { %1946 = vmatprep.subr.mxu0 %v2265_v16  ;;  %v899_v40 = vpop.permute.xlu1 %898 }
 0x1ca   :  { %v901_v39 = vpop.permute.xlu0 %900 }
 0x1cb   :  { %1939 = vmatmul.mubr.msk.f32.vlgmr.msra.gmra.mrb[6].mxu0 %vm401_vm2, %v732_v37 }
 0x1cc   :  { %1947 = vmatpush3.xpose.msk.msra.mxu0 %vm401_vm2, %v901_v39  ;;  %1948 = vmatprep.mubr.msk.f32.mxu0 %vm2266_vm1, %v2265_v16 }
 0x1cd   :  { %1956 = vmatprep.subr.mxu0 %v2265_v16  ;;  %v1246_v42 = vpop.permute.xlu1 %1245 }
 0x1ce   :  { %v1248_v41 = vpop.permute.xlu0 %1247 }
 0x1cf   :  { %1949 = vmatmul.mubr.msk.f32.vlgmr.msra.gmra.mrb[8].mxu0 %vm401_vm2, %v899_v40 }
 0x1d0   :  { %1957 = vmatpush3.xpose.msk.msra.mxu0 %vm401_vm2, %v304_v34  ;;  %1958 = vmatprep.mubr.msk.f32.mxu0 %vm2266_vm1, %v2265_v16 }
 0x1d1   :  { %1966 = vmatprep.subr.mxu0 %v2265_v16  ;;  %v1414_v44 = vpop.permute.xlu1 %1413 }
 0x1d2   :  { %v1416_v43 = vpop.permute.xlu0 %1415 }
 0x1d3   :  { %1959 = vmatmul.mubr.msk.f32.vlgmr.msra.gmra.mrb[10].mxu0 %vm401_vm2, %v210_v33 }
 0x1d4   :  { %1967 = vmatpush3.xpose.msk.msra.mxu0 %vm401_vm2, %v1248_v41  ;;  %1968 = vmatprep.mubr.msk.f32.mxu0 %vm2266_vm1, %v2265_v16 }
 0x1d5   :  { %1976 = vmatprep.subr.mxu0 %v2265_v16  ;;  %v1581_v46 = vpop.permute.xlu1 %1580 }
 0x1d6   :  { %v1583_v45 = vpop.permute.xlu0 %1582 }
 0x1d7   :  { %1969 = vmatmul.mubr.msk.f32.vlgmr.msra.gmra.mrb[12].mxu0 %vm401_vm2, %v1246_v42 }
 0x1d8   :  { %1977 = vmatpush3.xpose.msk.msra.mxu0 %vm401_vm2, %v1416_v43  ;;  %1978 = vmatprep.mubr.msk.f32.mxu0 %vm2266_vm1, %v2265_v16 }
 0x1d9   :  { %1986 = vmatprep.subr.mxu0 %v2265_v16 }
 0x1db   :  { %1979 = vmatmul.mubr.msk.f32.vlgmr.msra.gmra.mrb[14].mxu0 %vm401_vm2, %v1414_v44 }
 0x1dc   :  { %1987 = vmatpush3.xpose.msk.msra.mxu0 %vm401_vm2, %v1583_v45  ;;  %1988 = vmatprep.mubr.msk.f32.mxu0 %vm2266_vm1, %v2265_v16 }
 0x1df   :  { %1989 = vmatmul.mubr.msk.f32.vlgmr.msra.gmra.mrb[16].mxu0 %vm401_vm2, %v1581_v46 }
 0x226   :  { %v474_v52 = vpop.f32.mrb[2].mxu1 }
 0x227   :  { %v1920_v53 = vpop.f32.mrb[3].mxu1  ;;  %v478_v54 = vsel %vm401_vm2, %v474_v52, -inf }
 0x228   :  { %479 = vmax.xlane.f32.xlu0 %v478_v54 }
 0x29a   :  { %v637_v55 = vpop.f32.mrb[4].mxu0 }
 0x29b   :  { %v1930_v56 = vpop.f32.mrb[5].mxu0  ;;  %v641_v57 = vsel %vm401_vm2, %v637_v55, -inf }
 0x29c   :  { %642 = vmax.xlane.f32.xlu1 %v641_v57 }
 0x29e   :  { %v805_v58 = vpop.f32.mrb[6].mxu0 }
 0x29f   :  { %v1940_v59 = vpop.f32.mrb[7].mxu0  ;;  %v809_v60 = vsel %vm401_vm2, %v805_v58, -inf }
 0x2a0   :  { %810 = vmax.xlane.f32.xlu0 %v809_v60 }
 0x2a2   :  { %v972_v61 = vpop.f32.mrb[8].mxu0 }
 0x2a3   :  { %v1950_v62 = vpop.f32.mrb[9].mxu0  ;;  %v976_v63 = vsel %vm401_vm2, %v972_v61, -inf }
 0x2a4   :  { %977 = vmax.xlane.f32.xlu0 %v976_v63 }
 0x2a6   :  { %v1155_v0 = vpop.f32.mrb[10].mxu0 }
 0x2a7   :  { %v1960_v1 = vpop.f32.mrb[11].mxu0  ;;  %v1159_v2 = vsel %vm401_vm2, %v1155_v0, -inf }
 0x2a8   :  { %1160 = vmax.xlane.f32.xlu1 %v1159_v2 }
 0x2aa   :  { %v1319_v3 = vpop.f32.mrb[12].mxu0 }
 0x2ab   :  { %v1970_v4 = vpop.f32.mrb[13].mxu0  ;;  %v1323_v5 = vsel %vm401_vm2, %v1319_v3, -inf }
 0x2ac   :  { %1324 = vmax.xlane.f32.xlu0 %v1323_v5 }
 0x2ae   :  { %v1487_v6 = vpop.f32.mrb[14].mxu0 }
 0x2af   :  { %v1980_v7 = vpop.f32.mrb[15].mxu0  ;;  %v1491_v8 = vsel %vm401_vm2, %v1487_v6, -inf }
 0x2b0   :  { %1492 = vmax.xlane.f32.xlu1 %v1491_v8 }
 0x2b2   :  { %v1654_v9 = vpop.f32.mrb[16].mxu0 }
 0x2b3   :  { %v1990_v10 = vpop.f32.mrb[17].mxu0  ;;  %v1658_v11 = vsel %vm401_vm2, %v1654_v9, -inf }
 0x2b4   :  { %1659 = vmax.xlane.f32.xlu0 %v1658_v11 }
 0x2b5   :  { %v480_v12 = vpop.xlane.xlu0 %479 }
 0x2b6   :  { %v481_v13 = vsub.f32 %v474_v52, %v480_v12 }
 0x2b8   :  { %v482_v14 = vmul.f32 1.442695, %v481_v13 }
 0x2ba   :  { %2037 = vpow2.f32 %v482_v14 }
 0x2c1   :  { %655 = vrot.lane.b32.xlu1 %v393_v51, %s2268_s30 }
 0x2c4   :  { %v2038_v15 = vpop.eup %2037 }
 0x2c5   :  { %v484_v17 = vsel %vm401_vm2, %v2038_v15, 0.0 }
 0x2e5   :  { %485 = vadd.xlane.f32.xlu1 %v484_v17 }
 0x2f6   :  { %989 = vrot.lane.b32.xlu1 %v393_v51, %s2269_s4 }
 0x329   :  { %v643_v18 = vpop.xlane.xlu1 %642 }
 0x32a   :  { %v644_v19 = vsub.f32 %v637_v55, %v643_v18 }
 0x32c   :  { %v645_v20 = vmul.f32 1.442695, %v644_v19 }
 0x32d   :  { %v811_v21 = vpop.xlane.xlu0 %810 }
 0x32e   :  { %2039 = vpow2.f32 %v645_v20  ;;  %v812_v22 = vsub.f32 %v805_v58, %v811_v21 }
 0x330   :  { %v813_v23 = vmul.f32 1.442695, %v812_v22 }
 0x331   :  { %v978_v28 = vpop.xlane.xlu0 %977 }
 0x332   :  { %2041 = vpow2.f32 %v813_v23  ;;  %v979_v29 = vsub.f32 %v972_v61, %v978_v28 }
 0x334   :  { %v980_v33 = vmul.f32 1.442695, %v979_v29 }
 0x335   :  { %v1161_v30 = vpop.xlane.xlu1 %1160 }
 0x336   :  { %v1162_v32 = vsub.f32 %v1155_v0, %v1161_v30  ;;  %2043 = vpow2.f32 %v980_v33 }
 0x338   :  { %v2040_v24 = vpop.eup %2039  ;;  %v1163_v37 = vmul.f32 1.442695, %v1162_v32 }
 0x339   :  { %v647_v25 = vsel %vm401_vm2, %v2040_v24, 0.0  ;;  %v1325_v31 = vpop.xlane.xlu0 %1324 }
 0x33a   :  { %648 = vadd.xlane.f32.xlu0 %v647_v25  ;;  %v1326_v34 = vsub.f32 %v1319_v3, %v1325_v31  ;;  %2045 = vpow2.f32 %v1163_v37 }
 0x33c   :  { %v2525_v26 = vpop.eup %2041  ;;  %v1327_v39 = vmul.f32 1.442695, %v1326_v34 }
 0x33d   :  { %v815_v27 = vsel %vm401_vm2, %v2525_v26, 0.0  ;;  %v1493_v35 = vpop.xlane.xlu1 %1492 }
 0x33e   :  { %816 = vadd.xlane.f32.xlu1 %v815_v27  ;;  %v1494_v38 = vsub.f32 %v1487_v6, %v1493_v35  ;;  %2047 = vpow2.f32 %v1327_v39 }
 0x340   :  { %v1495_v41 = vmul.f32 1.442695, %v1494_v38  ;;  %v2044_v43 = vpop.eup %2043 }
 0x341   :  { %v1660_v36 = vpop.xlane.xlu0 %1659  ;;  %v656_v45 = vpop.permute.xlu1 %655  ;;  %v982_v46 = vsel %vm401_vm2, %v2044_v43, 0.0 }
 0x342   :  { %v1661_v40 = vsub.f32 %v1654_v9, %v1660_v36  ;;  %2049 = vpow2.f32 %v1495_v41 }
 0x344   :  { %v1662_v42 = vmul.f32 1.442695, %v1661_v40  ;;  %v2532_v44 = vpop.eup %2045 }
 0x346   :  { %2051 = vpow2.f32 %v1662_v42 }
 0x348   :  { %v2535_v47 = vpop.eup %2047 }
 0x349   :  { %v1329_v52 = vsel %vm401_vm2, %v2535_v47, 0.0 }
 0x34c   :  { %v2537_v48 = vpop.eup %2049 }
 0x34d   :  { %v1497_v54 = vsel %vm401_vm2, %v2537_v48, 0.0 }
 0x34f   :  { %1337 = vrot.lane.b32.xlu1 %v2510_v49, %s2268_s30 }
 0x350   :  { %822 = vrot.lane.b32.xlu0 %v393_v51, %s2267_s29  ;;  %v1165_v51 = vsel %vm401_vm2, %v2532_v44, 0.0  ;;  %v2543_v53 = vpop.eup %2051 }
 0x351   :  { %v1664_v55 = vsel %vm401_vm2, %v2543_v53, 0.0 }
 0x36f   :  { %983 = vadd.xlane.f32.xlu0 %v982_v46 }
 0x372   :  { %v486_v50 = vpop.xlane.xlu1 %485 }
 0x373   :  { %2053 = vrcp.f32 %v486_v50  ;;  %1166 = vadd.xlane.f32.xlu1 %v1165_v51  ;;  %1330 = vadd.xlane.f32.xlu0 %v1329_v52 }
 0x376   :  { %v990_v58 = vpop.permute.xlu1 %989 }
 0x377   :  { %1498 = vadd.xlane.f32.xlu1 %v1497_v54  ;;  %1665 = vadd.xlane.f32.xlu0 %v1664_v55 }
 0x37d   :  { %v2054_v56 = vpop.eup %2053 }
 0x37e   :  { %v488_v57 = vmul.f32 %v2054_v56, %v2038_v15 }
 0x380   :  { %489 = vst.msk [vmem:[#allocation14] sm:$0xff] %vm401_vm2, %v488_v57  ;;  %1924 = vmatmul.mubr.msk.f32.vlgmr.msra.gmra.mrb[4].mxu1 %vm401_vm2, %v488_v57 }
 0x381   :  { %1932 = vmatpush3.msra.mxu1 %v656_v45  ;;  %1933 = vmatprep.mubr.msk.f32.mxu1 %vm2266_vm1, %v2265_v16 }
 0x382   :  { %1941 = vmatprep.subr.mxu1 %v2265_v16 }
 0x388   :  { %1671 = vrot.lane.b32.xlu1 %v2510_v49, %s2269_s4 }
 0x38d   :  { %1504 = vrot.lane.b32.xlu0 %v2510_v49, %s2267_s29 }
 0x3c7   :  { %v649_v59 = vpop.xlane.xlu0 %648 }
 0x3c8   :  { %2055 = vrcp.f32 %v649_v59 }
 0x3cb   :  { %v817_v60 = vpop.xlane.xlu1 %816  ;;  %v823_v63 = vpop.permute.xlu0 %822 }
 0x3cc   :  { %2057 = vrcp.f32 %v817_v60 }
 0x3cf   :  { %v1338_v2 = vpop.permute.xlu1 %1337 }
 0x3d2   :  { %v2056_v61 = vpop.eup %2055 }
 0x3d3   :  { %v651_v62 = vmul.f32 %v2056_v61, %v2040_v24 }
 0x3d5   :  { %653 = vst.msk [vmem:[#allocation14 + $0x8] sm:$0xff] %vm401_vm2, %v651_v62  ;;  %1934 = vmatmul.mubr.msk.f32.vlgmr.msra.gmra.mrb[6].mxu1 %vm401_vm2, %v651_v62 }
 0x3d6   :  { %v2058_v0 = vpop.eup %2057  ;;  %1942 = vmatpush3.msra.mxu1 %v823_v63  ;;  %1943 = vmatprep.mubr.msk.f32.mxu1 %vm2266_vm1, %v2265_v16 }
 0x3d7   :  { %v819_v1 = vmul.f32 %v2058_v0, %v2525_v26  ;;  %1951 = vmatprep.subr.mxu1 %v2265_v16 }
 0x3d9   :  { %821 = vst.msk [vmem:[#allocation14 + $0x10] sm:$0xff] %vm401_vm2, %v819_v1  ;;  %1944 = vmatmul.mubr.msk.f32.vlgmr.msra.gmra.mrb[8].mxu1 %vm401_vm2, %v819_v1 }
 0x3da   :  { %1952 = vmatpush3.msra.mxu1 %v990_v58  ;;  %1953 = vmatprep.mubr.msk.f32.mxu1 %vm2266_vm1, %v2265_v16 }
 0x3db   :  { %1961 = vmatprep.subr.mxu1 %v2265_v16 }
 0x3fc   :  { %v984_v3 = vpop.xlane.xlu0 %983 }
 0x3fd   :  { %2059 = vrcp.f32 %v984_v3 }
 0x400   :  { %v1167_v4 = vpop.xlane.xlu1 %1166  ;;  %v1331_v5 = vpop.xlane.xlu0 %1330 }
 0x401   :  { %2061 = vrcp.f32 %v1167_v4 }
 0x402   :  { %2063 = vrcp.f32 %v1331_v5 }
 0x404   :  { %v1499_v6 = vpop.xlane.xlu1 %1498  ;;  %v1666_v7 = vpop.xlane.xlu0 %1665 }
 0x405   :  { %2065 = vrcp.f32 %v1499_v6 }
 0x406   :  { %2067 = vrcp.f32 %v1666_v7 }
 0x407   :  { %v2060_v8 = vpop.eup %2059 }
 0x408   :  { %v986_v9 = vmul.f32 %v2060_v8, %v2044_v43  ;;  %v1505_v18 = vpop.permute.xlu0 %1504  ;;  %v1672_v19 = vpop.permute.xlu1 %1671 }
 0x40a   :  { %988 = vst.msk [vmem:[#allocation14 + $0x18] sm:$0xff] %vm401_vm2, %v986_v9  ;;  %1954 = vmatmul.mubr.msk.f32.vlgmr.msra.gmra.mrb[10].mxu1 %vm401_vm2, %v986_v9 }
 0x40b   :  { %v2062_v10 = vpop.eup %2061  ;;  %1962 = vmatpush3.msra.mxu1 %v2510_v49  ;;  %1963 = vmatprep.mubr.msk.f32.mxu1 %vm2266_vm1, %v2265_v16 }
 0x40c   :  { %v2064_v11 = vpop.eup %2063  ;;  %v1169_v12 = vmul.f32 %v2062_v10, %v2532_v44  ;;  %1971 = vmatprep.subr.mxu1 %v2265_v16 }
 0x40d   :  { %v1333_v13 = vmul.f32 %v2064_v11, %v2535_v47 }
 0x40e   :  { %1171 = vst.msk [vmem:[#allocation14 + $0x20] sm:$0xff] %vm401_vm2, %v1169_v12  ;;  %1964 = vmatmul.mubr.msk.f32.vlgmr.msra.gmra.mrb[12].mxu1 %vm401_vm2, %v1169_v12 }
 0x40f   :  { %v2066_v14 = vpop.eup %2065  ;;  %1335 = vst.msk [vmem:[#allocation14 + $0x28] sm:$0xff] %vm401_vm2, %v1333_v13  ;;  %1972 = vmatpush3.msra.mxu1 %v1338_v2  ;;  %1973 = vmatprep.mubr.msk.f32.mxu1 %vm2266_vm1, %v2265_v16 }
 0x410   :  { %v2068_v49 = vpop.eup %2067  ;;  %v1501_v15 = vmul.f32 %v2066_v14, %v2537_v48  ;;  %1981 = vmatprep.subr.mxu1 %v2265_v16 }
 0x411   :  { %v1668_v17 = vmul.f32 %v2068_v49, %v2543_v53 }
 0x412   :  { %1503 = vst.msk [vmem:[#allocation14 + $0x30] sm:$0xff] %vm401_vm2, %v1501_v15  ;;  %1974 = vmatmul.mubr.msk.f32.vlgmr.msra.gmra.mrb[14].mxu1 %vm401_vm2, %v1333_v13 }
 0x413   :  { %1670 = vst.msk [vmem:[#allocation14 + $0x38] sm:$0xff] %vm401_vm2, %v1668_v17  ;;  %1982 = vmatpush3.msra.mxu1 %v1505_v18  ;;  %1983 = vmatprep.mubr.msk.f32.mxu1 %vm2266_vm1, %v2265_v16 }
 0x414   :  { %1991 = vmatprep.subr.mxu1 %v2265_v16 }
 0x416   :  { %1984 = vmatmul.mubr.msk.f32.vlgmr.msra.gmra.mrb[16].mxu1 %vm401_vm2, %v1501_v15 }
 0x417   :  { %1992 = vmatpush3.msra.mxu1 %v1672_v19  ;;  %1993 = vmatprep.mubr.msk.f32.mxu1 %vm2266_vm1, %v2265_v16 }
 0x41a   :  { %1994 = vmatmul.mubr.msk.f32.vlgmr.msra.gmra.mrb[18].mxu1 %vm401_vm2, %v1668_v17 }
 0x453   :  { %v559_v20 = vpop.f32.mrb[4].mxu1 }
 0x454   :  { %v1925_v21 = vpop.f32.mrb[5].mxu1 }
 0x4a8   :  { %v727_v22 = vpop.f32.mrb[6].mxu1 }
 0x4a9   :  { %1066 = vrot.lane.b32.xlu0 %v727_v22, %s2260_s26  ;;  %v1935_v23 = vpop.f32.mrb[7].mxu1 }
 0x4ac   :  { %v894_v24 = vpop.f32.mrb[8].mxu1 }
 0x4ad   :  { %1070 = vrot.lane.b32.xlu1 %v894_v24, %s2270_s8  ;;  %v1945_v25 = vpop.f32.mrb[9].mxu1 }
 0x4dd   :  { %v1061_v26 = vpop.f32.mrb[10].mxu1 }
 0x4de   :  { %1074 = vrot.lane.b32.xlu0 %v1061_v26, %s2271_s3  ;;  %v1955_v27 = vpop.f32.mrb[11].mxu1 }
 0x4e1   :  { %v1241_v28 = vpop.f32.mrb[12].mxu1 }
 0x4e2   :  { %v1965_v29 = vpop.f32.mrb[13].mxu1 }
 0x4e3   :  { %2212 = shalt.err (!%p2209_p10)
}
 0x4e4   :  { %s2213_s15 = scalar_lea.hbm %s2641_s10, 1024 }
 0x4e5   :  { %p2214_p11 = scmp.ne.s32.totalorder %s2641_s10, %s2213_s15  ;;  %p2217_p12 = scmp.lt.u32.totalorder %s2213_s15, %s2641_s10 }
 0x4e7   :  { %p2219_p13 = pnand %p2217_p12, %p2214_p11 }
 0x4e9   :  { %2222 = shalt.err (!%p2219_p13)
}
 0x4ea   :  { %1787 = dma.vmem_to_hbm [thread:$0]  %s1782_s12, 1024, %s2641_s10, [#allocation15], %s2259_s25, %s2259_s25, %s2260_s26   ;;  %v1409_v16 = vpop.f32.mrb[14].mxu1  ;;  %vm1078_vm3 = vcmask 130048   ;;  %vm1080_vm4 = vcmask 195584  }
 0x4eb   :  { %1748 = vrot.lane.b32.xlu1 %v1409_v16, %s2260_s26  ;;  %v1975_v30 = vpop.f32.mrb[15].mxu1  ;;  %s2273_s10 = smov [#allocation13]  }
 0x4ec   :  { %v1576_v31 = vpop.f32.mrb[16].mxu1  ;;  %s1769_s0 = sshll.u32 %s2273_s10, 4  ;;  %s1770_s0 = int_to_ptr.vmem [resolvable:$true] %s1769_s0 }
 0x4ed   :  { %1752 = vrot.lane.b32.xlu0 %v1576_v31, %s2270_s8  ;;  %v1985_v32 = vpop.f32.mrb[17].mxu1  ;;  %s2223_s20 = scalar_lea.vmem %s1770_s0, 256  ;;  %p2228_p1 = scmp.lt.s32.totalorder %s1770_s0, %s1770_s0 }
 0x4ee   :  { %v1743_v33 = vpop.f32.mrb[18].mxu1  ;;  %p2224_p0 = scmp.ne.s32.totalorder %s1770_s0, %s2223_s20  ;;  %p2229_p2 = scmp.lt.s32.totalorder %s2223_s20, %s2223_s20 }
 0x4ef   :  { %1756 = vrot.lane.b32.xlu1 %v1743_v33, %s2271_s3  ;;  %v1995_v34 = vpop.f32.mrb[19].mxu1 }
 0x4f0   :  { %p2230_p3 = por %p2229_p2, %p2228_p1 }
 0x4f2   :  { %p2231_p4 = pnand %p2230_p3, %p2224_p0 }
 0x51b   :  { %v1067_v35 = vpop.permute.xlu0 %1066 }
 0x51c   :  { %v1077_v37 = vsel %vm401_vm2, %v559_v20, %v1067_v35 }
 0x51f   :  { %v1071_v36 = vpop.permute.xlu1 %1070 }
 0x520   :  { %v1079_v38 = vsel %vm1078_vm3, %v1077_v37, %v1071_v36 }
 0x550   :  { %v1075_v39 = vpop.permute.xlu0 %1074 }
 0x551   :  { %v1081_v40 = vsel %vm1080_vm4, %v1079_v38, %v1075_v39 }
 0x552   :  { %1082 = vst.msk [vmem:[#allocation13] sm:$0xff] %vm131_vm0, %v1081_v40 }
 0x55d   :  { %v1749_v41 = vpop.permute.xlu1 %1748 }
 0x55e   :  { %v1759_v43 = vsel %vm401_vm2, %v1241_v28, %v1749_v41 }
 0x55f   :  { %v1753_v42 = vpop.permute.xlu0 %1752 }
 0x560   :  { %v1760_v44 = vsel %vm1078_vm3, %v1759_v43, %v1753_v42 }
 0x561   :  { %v1757_v45 = vpop.permute.xlu1 %1756 }
 0x562   :  { %v1761_v46 = vsel %vm1080_vm4, %v1760_v44, %v1757_v45 }
 0x563   :  { %1763 = vst.msk [vmem:[#allocation13 + $0x8] sm:$0xff] %vm131_vm0, %v1761_v46 }
 0x564   :  { %2234 = shalt.err (!%p2231_p4)
}
 0x565   :  { %s2235_s7 = scalar_lea.hbm %s2640_s9, 256 }
 0x566   :  { %p2236_p5 = scmp.ne.s32.totalorder %s2640_s9, %s2235_s7  ;;  %p2239_p6 = scmp.lt.u32.totalorder %s2235_s7, %s2640_s9 }
 0x568   :  { %p2241_p7 = pnand %p2239_p6, %p2236_p5 }
 0x56a   :  { %2244 = shalt.err (!%p2241_p7)
}
 0x56b   :  { %1775 = dma.vmem_to_hbm [thread:$0]  %s1770_s0, 256, %s2640_s9, [#allocation4], %s2259_s25, %s2259_s25, %s2260_s26  }
 0x56c   :  { %2253 = dma.done.wait [#allocation4], 256  }
 0x56d   :  { %2254 = vsyncadd [#allocation4], 4294967040 }
 0x56e   :  { %2255 = dma.done.wait [#allocation15], 1024  }
 0x56f   :  { %2256 = vsyncadd [#allocation15], 4294966272 }
 0x570   :  { %1794 = vsyncpa [#allocation3], 1 }
 0x571   :  { %1795 = vsyncpa [#allocation6], 1 }
 0x572   :  { %1796 = vsyncpa [#allocation9], 1 }
 0x573   :  { %1797 = vsyncpa [#allocation12], 1 }
 0x574   :  { %1798 = vsyncpa [#allocation4], 1 }
 0x575   :  { %1799 = vsyncpa [#allocation15], 1 }

</bundles_post_ra>
